<compile_context>
chip_gen: v5e
topology: v5e:2x2
jax: 0.10.0
libtpu: 0.0.40
codegen_flags: <defaults>
</compile_context>

<pallas_src>
import numpy as np
import jax
import jax.numpy as jnp
from jax.experimental import pallas as pl
from jax.experimental.pallas import tpu as pltpu

# ----------------------------- configuration ------------------------------
EMBED = 32
NUM_HEADS = 2
HEAD_CH = EMBED // NUM_HEADS
DEPTH = 2
WINDOW_SIZE = 4.0
QUANT_SIZE = 1.0
QUANT_GRID_LEN = int((2 * WINDOW_SIZE + 1e-4) // QUANT_SIZE)   # 8
NUM_BUCKETS = 2 * QUANT_GRID_LEN                               # 16
MLP_RATIO = 4.0
OUT_CHANNELS = 64
DOWN_RATIO = 0.25
K_DOWN = 4
SCALE = HEAD_CH ** (-0.5)


# ------------------------------ small helpers ------------------------------

def _round_up(x, m):
    return ((x + m - 1) // m) * m


def _row_tiles(m, max_tile=512):
    """Pick a row tile (multiple of 8) and the padded row count."""
    mp = _round_up(m, 8)
    tile = min(mp, max_tile)
    mp = _round_up(mp, tile)
    return mp, tile


def _erf(x):
    # Abramowitz & Stegun 7.1.26 rational approximation, |error| <= 1.5e-7
    # (f32-exact for practical purposes) -> exact erf-GELU without relying on a
    # lax.erf lowering inside Mosaic.
    a1, a2, a3, a4, a5 = 0.254829592, -0.284496736, 1.421413741, -1.453152027, 1.061405429
    p = 0.3275911
    ax = jnp.abs(x)
    t = 1.0 / (1.0 + p * ax)
    poly = ((((a5 * t + a4) * t + a3) * t + a2) * t + a1) * t
    y = 1.0 - poly * jnp.exp(-ax * ax)
    return jnp.where(x >= 0, y, -y)


def _gelu_exact(x):
    return 0.5 * x * (1.0 + _erf(x * 0.7071067811865476))


def _layernorm(x, g, b):
    mu = jnp.mean(x, axis=-1, keepdims=True)
    xc = x - mu
    var = jnp.mean(xc * xc, axis=-1, keepdims=True)
    return xc * jax.lax.rsqrt(var + 1e-5) * g + b


# ----------------------------- Pallas kernels ------------------------------

def _ln_linear_kernel(x_ref, g_ref, b_ref, w_ref, wb_ref, o_ref):
    # fused LayerNorm + Linear (qkv projection).  LN in f32, matmul in bf16.
    y = _layernorm(x_ref[...], g_ref[...], b_ref[...])
    o_ref[...] = jnp.dot(y.astype(jnp.bfloat16), w_ref[...],
                         preferred_element_type=jnp.float32) + wb_ref[...]


def pallas_ln_linear(x, g, b, w_bf16, wb):
    m, cin = x.shape
    cout = w_bf16.shape[1]
    mp, tm = _row_tiles(m)
    if mp != m:
        x = jnp.pad(x, ((0, mp - m), (0, 0)))
    out = pl.pallas_call(
        _ln_linear_kernel,
        out_shape=jax.ShapeDtypeStruct((mp, cout), jnp.float32),
        grid=(mp // tm,),
        in_specs=[pl.BlockSpec((tm, cin), lambda i: (i, 0)),
                  pl.BlockSpec((1, cin), lambda i: (0, 0)),
                  pl.BlockSpec((1, cin), lambda i: (0, 0)),
                  pl.BlockSpec((cin, cout), lambda i: (0, 0)),
                  pl.BlockSpec((1, cout), lambda i: (0, 0))],
        out_specs=pl.BlockSpec((tm, cout), lambda i: (i, 0)),
        compiler_params=pltpu.CompilerParams(dimension_semantics=("parallel",)),
    )(x, g, b, w_bf16, wb)
    return out[:m]


def _attn_kernel(q_ref, kt_ref, v_ref, fq_ref, fk_ref, tv_ref, mask_ref, rpi_ref,
                 o_ref):
    # One attention head per grid step.  Dense masked attention == scatter_softmax
    # over the duplicate-free pair list (every point self-pairs -> rows non-empty).
    nb = fq_ref.shape[-1]                        # rel-pos buckets (= 2*quant_grid_len)
    q = q_ref[0]                                 # (N, Ch)  already scaled
    kt = kt_ref[0]                               # (Ch, N)
    v = v_ref[0]                                 # (N, Ch)
    fq = fq_ref[0]                               # (3, N, nb)  q_i . Tq[b, h, :, d]
    fk = fk_ref[0]                               # (3, N, nb)  k_j . Tk[b, h, :, d]
    tv = tv_ref[0]                               # (3, nb, Ch) Tv[b, h, :, d]
    rpi = rpi_ref[...]                           # (3, N, N)   quantized rel-pos bucket
    m = mask_ref[...].astype(jnp.float32)        # (N, N)      1 = pair, 0 = no pair

    iota_b = jax.lax.broadcasted_iota(jnp.int32, (1, 1, nb), 2)

    # scores on the MXU: bf16 operands, f32 accumulation
    s = jnp.dot(q.astype(jnp.bfloat16), kt.astype(jnp.bfloat16),
                preferred_element_type=jnp.float32)

    # bucketed relative-position query/key bias (no (N,N,H) HBM materialization)
    for d in range(3):
        oh = (rpi[d][:, :, None] == iota_b).astype(jnp.float32)          # (N, N, nb)
        s = s + jnp.sum(oh * (fq[d][:, None, :] + fk[d][None, :, :]), axis=-1)

    # masked softmax: additive mask before the row max, post-exp multiply keeps
    # masked entries exactly zero (== scatter_softmax over the pair list)
    s = s + (m - 1.0) * 1e9
    s = s - jnp.max(s, axis=-1, keepdims=True)
    p = jnp.exp(s) * m
    inv = pl.reciprocal(jnp.sum(p, axis=-1, keepdims=True), approx=True)
    a = p * inv

    out = jnp.dot(a.astype(jnp.bfloat16), v.astype(jnp.bfloat16),
                  preferred_element_type=jnp.float32)

    # bucketed relative-position value contribution:
    #   out[i,:] += sum_d (sum_j a[i,j] * onehot(rpi[d,i,j])) @ Tv[:, h, :, d]
    for d in range(3):
        oh = (rpi[d][:, :, None] == iota_b).astype(jnp.float32)          # (N, N, nb)
        sd = jnp.sum(a[:, :, None] * oh, axis=1)                         # (N, nb)
        out = out + jnp.dot(sd, tv[d], preferred_element_type=jnp.float32)

    o_ref[0] = out


def pallas_window_attention(qh, kth, vh, fqh, fkh, tvh, mask_i8, rpi):
    h, n, ch = qh.shape
    nb = fqh.shape[-1]
    return pl.pallas_call(
        _attn_kernel,
        out_shape=jax.ShapeDtypeStruct((h, n, ch), jnp.float32),
        grid=(h,),
        in_specs=[pl.BlockSpec((1, n, ch), lambda i: (i, 0, 0)),
                  pl.BlockSpec((1, ch, n), lambda i: (i, 0, 0)),
                  pl.BlockSpec((1, n, ch), lambda i: (i, 0, 0)),
                  pl.BlockSpec((1, 3, n, nb), lambda i: (i, 0, 0, 0)),
                  pl.BlockSpec((1, 3, n, nb), lambda i: (i, 0, 0, 0)),
                  pl.BlockSpec((1, 3, nb, ch), lambda i: (i, 0, 0, 0)),
                  pl.BlockSpec((n, n), lambda i: (0, 0)),
                  pl.BlockSpec((3, n, n), lambda i: (0, 0, 0))],
        out_specs=pl.BlockSpec((1, n, ch), lambda i: (i, 0, 0)),
        compiler_params=pltpu.CompilerParams(
            dimension_semantics=("parallel",),
            vmem_limit_bytes=32 * 1024 * 1024),
    )(qh, kth, vh, fqh, fkh, tvh, mask_i8, rpi)


def _proj_mlp_kernel(a_ref, s_ref, pw_ref, pb_ref, g_ref, b_ref,
                     w1_ref, b1_ref, w2_ref, b2_ref, o_ref):
    # fused: proj + residual + LN2 + fc1 + exact GELU + fc2 + residual
    x = jnp.dot(a_ref[...].astype(jnp.bfloat16), pw_ref[...],
                preferred_element_type=jnp.float32) + pb_ref[...]
    feats = s_ref[...] + x
    y = _layernorm(feats, g_ref[...], b_ref[...])
    hid = jnp.dot(y.astype(jnp.bfloat16), w1_ref[...],
                  preferred_element_type=jnp.float32) + b1_ref[...]
    hid = _gelu_exact(hid)
    out = jnp.dot(hid.astype(jnp.bfloat16), w2_ref[...],
                  preferred_element_type=jnp.float32) + b2_ref[...]
    o_ref[...] = feats + out


def pallas_proj_mlp(attn_cat, shortcut, pw, pb, g, b, w1, b1, w2, b2):
    m, c = attn_cat.shape
    hidden = w1.shape[1]
    mp, tm = _row_tiles(m)
    if mp != m:
        attn_cat = jnp.pad(attn_cat, ((0, mp - m), (0, 0)))
        shortcut = jnp.pad(shortcut, ((0, mp - m), (0, 0)))
    out = pl.pallas_call(
        _proj_mlp_kernel,
        out_shape=jax.ShapeDtypeStruct((mp, c), jnp.float32),
        grid=(mp // tm,),
        in_specs=[pl.BlockSpec((tm, c), lambda i: (i, 0)),
                  pl.BlockSpec((tm, c), lambda i: (i, 0)),
                  pl.BlockSpec((c, c), lambda i: (0, 0)),
                  pl.BlockSpec((1, c), lambda i: (0, 0)),
                  pl.BlockSpec((1, c), lambda i: (0, 0)),
                  pl.BlockSpec((1, c), lambda i: (0, 0)),
                  pl.BlockSpec((c, hidden), lambda i: (0, 0)),
                  pl.BlockSpec((1, hidden), lambda i: (0, 0)),
                  pl.BlockSpec((hidden, c), lambda i: (0, 0)),
                  pl.BlockSpec((1, c), lambda i: (0, 0))],
        out_specs=pl.BlockSpec((tm, c), lambda i: (i, 0)),
        compiler_params=pltpu.CompilerParams(dimension_semantics=("parallel",)),
    )(attn_cat, shortcut, pw, pb, g, b, w1, b1, w2, b2)
    return out[:m]


def _down_kernel(x_ref, g_ref, b_ref, w_ref, o_ref):
    # fused TransitionDown: LayerNorm + bias-free Linear + max over k neighbours.
    # channel dim (64) stays in the lanes; the k=4 reduction runs on the sublane
    # axis via an unrolled running max (no (m, C, 4) last-dim-4 layout).
    x = x_ref[...]                                # (tm, K, Cin)
    y = _layernorm(x, g_ref[...], b_ref[...])
    w = w_ref[...]                                # (Cin, Cout) bf16
    out = jnp.dot(y[:, 0, :].astype(jnp.bfloat16), w,
                  preferred_element_type=jnp.float32)
    for kk in range(1, x.shape[1]):
        out = jnp.maximum(out, jnp.dot(y[:, kk, :].astype(jnp.bfloat16), w,
                                       preferred_element_type=jnp.float32))
    o_ref[...] = out


def pallas_down(grouped, g, b, w_bf16):
    m, k, cin = grouped.shape
    cout = w_bf16.shape[1]
    mp, tm = _row_tiles(m)
    if mp != m:
        grouped = jnp.pad(grouped, ((0, mp - m), (0, 0), (0, 0)))
    out = pl.pallas_call(
        _down_kernel,
        out_shape=jax.ShapeDtypeStruct((mp, cout), jnp.float32),
        grid=(mp // tm,),
        in_specs=[pl.BlockSpec((tm, k, cin), lambda i: (i, 0, 0)),
                  pl.BlockSpec((1, cin), lambda i: (0, 0)),
                  pl.BlockSpec((1, cin), lambda i: (0, 0)),
                  pl.BlockSpec((cin, cout), lambda i: (0, 0))],
        out_specs=pl.BlockSpec((tm, cout), lambda i: (i, 0)),
        compiler_params=pltpu.CompilerParams(dimension_semantics=("parallel",)),
    )(grouped, g, b, w_bf16)
    return out[:m]


# ------------------- host-side (NumPy) index construction ------------------

def offset2batch_np(offset):
    n = int(offset[-1])
    batch = np.zeros(n, dtype=np.int64)
    prev = 0
    for i, o in enumerate(offset):
        batch[prev:int(o)] = i
        prev = int(o)
    return batch


def voxel_grid_np(coords, batch, size, start):
    if start is None:
        start = coords.min(axis=0)
    v = np.floor((coords - start) / size).astype(np.int64)
    rows = np.concatenate([batch[:, None], v], axis=1)
    _, cluster = np.unique(rows, axis=0, return_inverse=True)
    return cluster


def grid_sample_np(coords, batch, size, start):
    cluster = voxel_grid_np(coords, batch, size, start)
    unique, cluster_inv, counts = np.unique(cluster, return_inverse=True,
                                            return_counts=True)
    nvox = unique.shape[0]
    k = int(counts.max())
    p2v_map = np.zeros((nvox, k), dtype=np.int64)
    order = np.argsort(cluster_inv, kind="stable")
    mask = np.arange(k)[None, :] < counts[:, None]
    p2v_map[mask] = order
    return cluster_inv, p2v_map, counts


def fps_np(coords, offset, new_offset):
    idx_all = []
    prev, nprev = 0, 0
    for b in range(len(offset)):
        s, e = prev, int(offset[b])
        m = int(new_offset[b]) - nprev
        pts = coords[s:e]
        n_b = e - s
        sel = np.zeros(m, dtype=np.int64)
        dist = np.full(n_b, 1e10, dtype=np.float64)
        cur = 0
        for j in range(1, m):
            d = np.sum((pts - pts[cur]) ** 2, axis=1)
            dist = np.minimum(dist, d)
            cur = int(np.argmax(dist))
            sel[j] = cur
        idx_all.append(sel + s)
        prev, nprev = e, int(new_offset[b])
    return np.concatenate(idx_all)


def knn_group_np(k, coords, new_coords, offset, new_offset):
    idx_all = []
    prev, nprev = 0, 0
    for b in range(len(offset)):
        s, e = prev, int(offset[b])
        ns, ne = nprev, int(new_offset[b])
        pts = coords[s:e]
        q = new_coords[ns:ne]
        d = np.sum((q[:, None, :] - pts[None, :, :]) ** 2, axis=-1)
        nn = np.argsort(d, axis=1, kind="stable")[:, :k] + s
        idx_all.append(nn)
        prev, nprev = e, int(new_offset[b])
    return np.concatenate(idx_all, axis=0)


def build_pair_mask(n_points, p2v_map, counts, new_p2v_map, new_counts,
                    coords, coords_min, window_size, down_idx, shifted):
    # small-window pairs
    nw, k = p2v_map.shape
    mask = np.arange(k)[None, :] < counts[:, None]
    mask_mat = mask[:, :, None] & mask[:, None, :]
    i0 = np.broadcast_to(p2v_map[:, :, None], (nw, k, k))[mask_mat]
    i1 = np.broadcast_to(p2v_map[:, None, :], (nw, k, k))[mask_mat]
    # big-window (stratified, downsampled keys) pairs
    down_pt = np.zeros(n_points, dtype=bool)
    down_pt[down_idx] = True
    nw2, k2 = new_p2v_map.shape
    down_mask = down_pt[new_p2v_map]
    mask2 = np.arange(k2)[None, :] < new_counts[:, None]
    down_mask = down_mask & mask2
    mask_mat2 = mask2[:, :, None] & down_mask[:, None, :]
    if not shifted:
        wc = np.floor((coords[new_p2v_map] - coords_min) / window_size)
    else:
        wc = np.floor((coords[new_p2v_map] - coords_min + 0.5 * window_size)
                      / window_size)
    prev = (wc[:, :, None, :] != wc[:, None, :, :]).any(-1)
    mask_mat2 = mask_mat2 & prev
    ni0 = np.broadcast_to(new_p2v_map[:, :, None], (nw2, k2, k2))[mask_mat2]
    ni1 = np.broadcast_to(new_p2v_map[:, None, :], (nw2, k2, k2))[mask_mat2]
    i0 = np.concatenate([i0, ni0])
    i1 = np.concatenate([i1, ni1])
    dense = np.zeros((n_points, n_points), dtype=bool)
    dense[i0, i1] = True
    return dense


# --------------------------- model forward (JAX) ---------------------------

def block_forward(p, feats, rpi, mask_i8):
    n, c = feats.shape
    h, ch = NUM_HEADS, HEAD_CH
    a = p["attn"]

    # fused LN1 + qkv projection
    qkv = pallas_ln_linear(feats, p["ln1_g"], p["ln1_b"],
                           a["qkv_w_bf16"], a["qkv_b"]).reshape(n, 3, h, ch)
    q = qkv[:, 0] * SCALE            # scaled query (as in the torch reference)
    k = qkv[:, 1]
    v = qkv[:, 2]

    # tiny per-point bucket projections feeding the in-kernel bucketed bias:
    # fq[n,h,b,d] = q[n,h,:] . Tq[b,h,:,d]   (N*H*16*3 floats — negligible)
    fq = jnp.einsum("nhc,bhcd->nhbd", q, a["tq"])
    fk = jnp.einsum("nhc,bhcd->nhbd", k, a["tk"])

    qh = q.transpose(1, 0, 2)              # (H, N, Ch)
    kth = k.transpose(1, 2, 0)             # (H, Ch, N)
    vh = v.transpose(1, 0, 2)              # (H, N, Ch)
    fqh = fq.transpose(1, 3, 0, 2)         # (H, 3, N, B)
    fkh = fk.transpose(1, 3, 0, 2)         # (H, 3, N, B)
    tvh = a["tv"].transpose(1, 3, 0, 2)    # (H, 3, B, Ch)

    attn = pallas_window_attention(qh, kth, vh, fqh, fkh, tvh, mask_i8, rpi)
    attn = attn.transpose(1, 0, 2).reshape(n, c)

    # fused proj + residual + LN2 + MLP (exact erf-GELU) + residual
    return pallas_proj_mlp(attn, feats, a["proj_w_bf16"], a["proj_b"],
                           p["ln2_g"], p["ln2_b"],
                           p["fc1_w_bf16"], p["fc1_b"],
                           p["fc2_w_bf16"], p["fc2_b"])


def transition_down_forward(p, feats, coords, offset_np, new_offset_np, down_idx):
    coords_np = np.asarray(coords)
    new_coords = coords[jnp.asarray(down_idx)]
    nn_idx = knn_group_np(K_DOWN, coords_np, coords_np[down_idx],
                          offset_np, new_offset_np)              # (m, k)
    grouped = feats[jnp.asarray(nn_idx)]                          # (m, k, C)
    pooled = pallas_down(grouped, p["norm_g"], p["norm_b"], p["lin_w_bf16"])
    return pooled, new_coords, jnp.asarray(new_offset_np, dtype=jnp.int32)


def basic_layer_forward(params, feats, coords, offset_np):
    coords_np = np.asarray(coords)
    n = coords_np.shape[0]
    batch = offset2batch_np(offset_np)

    # downsample offsets + furthest point sampling (host-side, like the reference)
    new_offset = [int(offset_np[0] * DOWN_RATIO) + 1]
    count = new_offset[0]
    for i in range(1, len(offset_np)):
        count += int((offset_np[i] - offset_np[i - 1]) * DOWN_RATIO) + 1
        new_offset.append(count)
    new_offset = np.array(new_offset, dtype=np.int64)
    down_idx = fps_np(coords_np, offset_np, new_offset)

    coords_min = coords_np.min(axis=0)
    size = np.array([WINDOW_SIZE] * 3, dtype=coords_np.dtype)
    new_size = 2.0 * size

    _, p2v, counts = grid_sample_np(coords_np, batch, size, None)
    _, sp2v, scounts = grid_sample_np(coords_np + 0.5 * size, batch, size, coords_min)
    _, np2v, ncounts = grid_sample_np(coords_np, batch, new_size, None)
    _, snp2v, sncounts = grid_sample_np(coords_np + 0.5 * new_size, batch,
                                        new_size, coords_min)

    masks_i8 = [
        jnp.asarray(build_pair_mask(n, p2v, counts, np2v, ncounts, coords_np,
                                    coords_min, WINDOW_SIZE, down_idx,
                                    shifted=False).astype(np.int8)),
        jnp.asarray(build_pair_mask(n, sp2v, scounts, snp2v, sncounts, coords_np,
                                    coords_min, WINDOW_SIZE, down_idx,
                                    shifted=True).astype(np.int8)),
    ]

    # quantized relative-position bucket indices, shared by all blocks: (3, N, N)
    rel = coords[:, None, :] - coords[None, :, :]
    rel = jnp.round(rel * 100000.0) / 100000.0
    rpi = jnp.floor((rel + 2.0 * WINDOW_SIZE - 0.0001) / QUANT_SIZE)
    rpi = jnp.clip(rpi, 0, NUM_BUCKETS - 1).astype(jnp.int32).transpose(2, 0, 1)

    for i in range(DEPTH):
        feats = block_forward(params["blocks"][i], feats, rpi, masks_i8[i % 2])

    feats_down, coords_down, offset_down = transition_down_forward(
        params["down"], feats, coords, offset_np, new_offset, down_idx)
    return (feats, coords, jnp.asarray(offset_np, jnp.int32),
            feats_down, coords_down, offset_down)


# --------------------------- deterministic params ---------------------------

def init_params(key):
    c, h, ch = EMBED, NUM_HEADS, HEAD_CH
    l2 = NUM_BUCKETS
    hidden = int(EMBED * MLP_RATIO)
    keys = iter(jax.random.split(key, 64))

    def nrm(shape, scale=0.02):
        return jax.random.normal(next(keys), shape, jnp.float32) * scale

    blocks = []
    for _ in range(DEPTH):
        blk = dict(
            ln1_g=jnp.ones((1, c), jnp.float32), ln1_b=jnp.zeros((1, c), jnp.float32),
            ln2_g=jnp.ones((1, c), jnp.float32), ln2_b=jnp.zeros((1, c), jnp.float32),
            attn=dict(
                qkv_w=nrm((c, 3 * c)), qkv_b=nrm((1, 3 * c)),
                proj_w=nrm((c, c)), proj_b=nrm((1, c)),
                tq=nrm((l2, h, ch, 3)), tk=nrm((l2, h, ch, 3)), tv=nrm((l2, h, ch, 3)),
            ),
            fc1_w=nrm((c, hidden)), fc1_b=nrm((1, hidden)),
            fc2_w=nrm((hidden, c)), fc2_b=nrm((1, c)),
        )
        # bf16 copies of matmul weights (f32 masters kept for reference semantics)
        blk["attn"]["qkv_w_bf16"] = blk["attn"]["qkv_w"].astype(jnp.bfloat16)
        blk["attn"]["proj_w_bf16"] = blk["attn"]["proj_w"].astype(jnp.bfloat16)
        blk["fc1_w_bf16"] = blk["fc1_w"].astype(jnp.bfloat16)
        blk["fc2_w_bf16"] = blk["fc2_w"].astype(jnp.bfloat16)
        blocks.append(blk)

    down = dict(
        norm_g=jnp.ones((1, c), jnp.float32), norm_b=jnp.zeros((1, c), jnp.float32),
        lin_w=nrm((c, OUT_CHANNELS)),
    )
    down["lin_w_bf16"] = down["lin_w"].astype(jnp.bfloat16)
    return dict(blocks=blocks, down=down)


# ---------------------------------- main ------------------------------------

if __name__ == "__main__":
    key = jax.random.PRNGKey(0)
    kc, kf, kp = jax.random.split(key, 3)

    N = 32
    offset = np.array([16, 32], dtype=np.int64)   # two batches of 16 points
    coords = jax.random.uniform(kc, (N, 3), jnp.float32, 0.0, 10.0)
    feats = jax.random.normal(kf, (N, EMBED), jnp.float32)
    params = init_params(kp)

    (feats_o, coords_o, offset_o,
     feats_d, coords_d, offset_d) = basic_layer_forward(params, feats, coords, offset)

    jax.block_until_ready((feats_o, coords_o, feats_d, coords_d))
    assert feats_o.shape == (N, EMBED)
    assert feats_d.shape == (int(offset_d[-1]), OUT_CHANNELS)
    assert bool(jnp.all(jnp.isfinite(feats_o)))
    assert bool(jnp.all(jnp.isfinite(feats_d)))
    print("KERNEL_OK")
</pallas_src>

<mosaic_0001>
module attributes {stable_mosaic.version = 11 : i64} {
  func.func @_ln_linear_kernel(%arg0: i32, %arg1: memref<32x32xf32, #tpu.memory_space<vmem>>, %arg2: memref<1x32xf32, #tpu.memory_space<vmem>>, %arg3: memref<1x32xf32, #tpu.memory_space<vmem>>, %arg4: memref<32x96xbf16, #tpu.memory_space<vmem>>, %arg5: memref<1x96xf32, #tpu.memory_space<vmem>>, %arg6: memref<32x96xf32, #tpu.memory_space<vmem>>) attributes {dimension_semantics = [#tpu.dimension_semantics<parallel>], iteration_bounds = array<i64: 1>, scalar_prefetch = 0 : i64, scratch_operands = 0 : i64, tpu.core_type = #tpu.core_type<tc>, window_params = [{transform_indices = @transform_0, window_bounds = array<i64: 32, 32>}, {pipeline_mode = #tpu.pipeline_mode<synchronous>, transform_indices = @transform_1, window_bounds = array<i64: 1, 32>}, {pipeline_mode = #tpu.pipeline_mode<synchronous>, transform_indices = @transform_2, window_bounds = array<i64: 1, 32>}, {pipeline_mode = #tpu.pipeline_mode<synchronous>, transform_indices = @transform_3, window_bounds = array<i64: 32, 96>}, {pipeline_mode = #tpu.pipeline_mode<synchronous>, transform_indices = @transform_4, window_bounds = array<i64: 1, 96>}, {transform_indices = @transform_5, window_bounds = array<i64: 32, 96>}]} {
    %c0 = arith.constant 0 : index
    %c0_0 = arith.constant 0 : index
    %0 = vector.load %arg1[%c0, %c0_0] : memref<32x32xf32, #tpu.memory_space<vmem>>, vector<32x32xf32>
    %c0_1 = arith.constant 0 : index
    %c0_2 = arith.constant 0 : index
    %1 = vector.load %arg2[%c0_1, %c0_2] : memref<1x32xf32, #tpu.memory_space<vmem>>, vector<1x32xf32>
    %c0_3 = arith.constant 0 : index
    %c0_4 = arith.constant 0 : index
    %2 = vector.load %arg3[%c0_3, %c0_4] : memref<1x32xf32, #tpu.memory_space<vmem>>, vector<1x32xf32>
    %cst = arith.constant dense<0.000000e+00> : vector<32xf32>
    %3 = vector.multi_reduction <add>, %0, %cst [1] : vector<32x32xf32> to vector<32xf32>
    %4 = vector.shape_cast %3 : vector<32xf32> to vector<32x1xf32>
    %cst_5 = arith.constant 3.200000e+01 : f32
    %5 = vector.broadcast %cst_5 : f32 to vector<32x1xf32>
    %6 = arith.divf %4, %5 : vector<32x1xf32>
    %7 = vector.broadcast %6 : vector<32x1xf32> to vector<32x32xf32>
    %8 = arith.subf %0, %7 : vector<32x32xf32>
    %9 = arith.mulf %8, %8 : vector<32x32xf32>
    %cst_6 = arith.constant dense<0.000000e+00> : vector<32xf32>
    %10 = vector.multi_reduction <add>, %9, %cst_6 [1] : vector<32x32xf32> to vector<32xf32>
    %11 = vector.shape_cast %10 : vector<32xf32> to vector<32x1xf32>
    %cst_7 = arith.constant 3.200000e+01 : f32
    %12 = vector.broadcast %cst_7 : f32 to vector<32x1xf32>
    %13 = arith.divf %11, %12 : vector<32x1xf32>
    %cst_8 = arith.constant 9.99999974E-6 : f32
    %14 = vector.broadcast %cst_8 : f32 to vector<32x1xf32>
    %15 = arith.addf %13, %14 : vector<32x1xf32>
    %16 = math.rsqrt %15 : vector<32x1xf32>
    %17 = vector.broadcast %16 : vector<32x1xf32> to vector<32x32xf32>
    %18 = arith.mulf %8, %17 : vector<32x32xf32>
    %19 = vector.broadcast %1 : vector<1x32xf32> to vector<32x32xf32>
    %20 = arith.mulf %18, %19 : vector<32x32xf32>
    %21 = vector.broadcast %2 : vector<1x32xf32> to vector<32x32xf32>
    %22 = arith.addf %20, %21 : vector<32x32xf32>
    %23 = arith.truncf %22 : vector<32x32xf32> to vector<32x32xbf16>
    %c0_9 = arith.constant 0 : index
    %c0_10 = arith.constant 0 : index
    %24 = vector.load %arg4[%c0_9, %c0_10] : memref<32x96xbf16, #tpu.memory_space<vmem>>, vector<32x96xbf16>
    %cst_11 = arith.constant dense<0.000000e+00> : vector<32x96xf32>
    %25 = tpu.matmul %23, %24, %cst_11 {dimension_numbers = #tpu.dot_dimension_numbers<[1], [0], [0], [1], [0, 0, 1, 1], [], []>} : vector<32x32xbf16>, vector<32x96xbf16>, vector<32x96xf32> -> vector<32x96xf32>
    %c0_12 = arith.constant 0 : index
    %c0_13 = arith.constant 0 : index
    %26 = vector.load %arg5[%c0_12, %c0_13] : memref<1x96xf32, #tpu.memory_space<vmem>>, vector<1x96xf32>
    %27 = vector.broadcast %26 : vector<1x96xf32> to vector<32x96xf32>
    %28 = arith.addf %25, %27 : vector<32x96xf32>
    %c0_14 = arith.constant 0 : index
    %c0_15 = arith.constant 0 : index
    %29 = vector.load %arg6[%c0_14, %c0_15] : memref<32x96xf32, #tpu.memory_space<vmem>>, vector<32x96xf32>
    tpu.vector_store %arg6[%c0_14, %c0_15], %28 {strides = array<i32>} : memref<32x96xf32, #tpu.memory_space<vmem>>, vector<32x96xf32>,
    return
  }
  func.func @transform_0(%arg0: i32) -> (i32, i32) {
    %c0_i32 = arith.constant 0 : i32
    %c0_i32_0 = arith.constant 0 : i32
    return %arg0, %c0_i32 : i32, i32
  }
  func.func @transform_1(%arg0: i32) -> (i32, i32) {
    %c0_i32 = arith.constant 0 : i32
    %c0_i32_0 = arith.constant 0 : i32
    %c0_i32_1 = arith.constant 0 : i32
    return %c0_i32, %c0_i32_0 : i32, i32
  }
  func.func @transform_2(%arg0: i32) -> (i32, i32) {
    %c0_i32 = arith.constant 0 : i32
    %c0_i32_0 = arith.constant 0 : i32
    %c0_i32_1 = arith.constant 0 : i32
    return %c0_i32, %c0_i32_0 : i32, i32
  }
  func.func @transform_3(%arg0: i32) -> (i32, i32) {
    %c0_i32 = arith.constant 0 : i32
    %c0_i32_0 = arith.constant 0 : i32
    %c0_i32_1 = arith.constant 0 : i32
    return %c0_i32, %c0_i32_0 : i32, i32
  }
  func.func @transform_4(%arg0: i32) -> (i32, i32) {
    %c0_i32 = arith.constant 0 : i32
    %c0_i32_0 = arith.constant 0 : i32
    %c0_i32_1 = arith.constant 0 : i32
    return %c0_i32, %c0_i32_0 : i32, i32
  }
  func.func @transform_5(%arg0: i32) -> (i32, i32) {
    %c0_i32 = arith.constant 0 : i32
    %c0_i32_0 = arith.constant 0 : i32
    return %arg0, %c0_i32 : i32, i32
  }
}

</mosaic_0001>

<bundles_post_ra>
// kernel: tpu_custom_call.1
= control target key start
LH: loop header
LB: loop body
LE: loop exit
PB: predicated region body
PF: predicated region fallthrough
CT: control target
= control target key end

     0   :  { %10 = vsyncpa [#allocation3], 0  ;;  %s490_s0 = inlined_call_operand.hbm [shape: f32[32,32], index: 0, kind: input, shape index: {}]   ;;  %s491_s1 = inlined_call_operand.hbm [shape: f32[1,32], index: 1, kind: input, shape index: {}]   ;;  %s492_s2 = inlined_call_operand.vmem [shape: f32[1,32], index: 2, kind: input, shape index: {}]   ;;  %s493_s3 = inlined_call_operand.hbm [shape: bf16[32,96], index: 3, kind: input, shape index: {}]   ;;  %s494_s4 = inlined_call_operand.vmem [shape: f32[1,96], index: 4, kind: input, shape index: {}]   ;;  %s495_s5 = inlined_call_operand.hbm [shape: f32[32,96], index: 5, kind: output, shape index: {}]  }
   0x1   :  { %11 = vsyncpa [#allocation6], 0  ;;  %s31_s20 = sshll.u32 %s491_s1, 4  ;;  %s32_s20 = int_to_ptr.hbm [resolvable:$true] %s31_s20 }
   0x2   :  { %12 = vsyncpa [#allocation4], 0  ;;  %s393_s21 = smov [#allocation5]   ;;  %s17_s25 = sshll.u32 %s490_s0, 4  ;;  %s18_s25 = int_to_ptr.hbm [resolvable:$true] %s17_s25 }
   0x3   :  { %s33_s22 = sshll.u32 %s393_s21, 4  ;;  %s394_s26 = smov [#allocation2]   ;;  %s34_s22 = int_to_ptr.vmem [resolvable:$true] %s33_s22 }
   0x4   :  { %36 = dma.hbm_to_vmem [thread:$0]  %s32_s20, 16, %s34_s22, [#allocation6]  }
   0x5   :  { %s19_s27 = sshll.u32 %s394_s26, 4  ;;  %s395_s28 = smov 128   ;;  %s20_s27 = int_to_ptr.vmem [resolvable:$true] %s19_s27 }
   0x6   :  { %s396_s29 = smov 8   ;;  %s43_s6 = sshll.u32 %s493_s3, 4  ;;  %s44_s6 = int_to_ptr.hbm [resolvable:$true] %s43_s6 }
   0x7   :  { %25 = dma.hbm_to_vmem [thread:$0]  %s18_s25, 512, %s20_s27, [#allocation3], %s395_s28, %s395_s28, %s396_s29  }
   0x8   :  { %s397_s7 = smov [#allocation7]   ;;  %s398_s0 = smov 64  }
   0x9   :  { %s45_s8 = sshll.u32 %s397_s7, 4  ;;  %s399_s9 = smov 4   ;;  %s46_s8 = int_to_ptr.vmem [resolvable:$true] %s45_s8 }
   0xa   :  { %51 = dma.hbm_to_vmem [thread:$0]  %s44_s6, 256, %s46_s8, [#allocation6], %s398_s0, %s398_s0, %s399_s9  }
   0xb   :  { %387 = dma.done.wait [#allocation3], 512  }
   0xc   :  { %388 = vsyncadd [#allocation3], 4294966784 }
   0xd   :  { %389 = dma.done.wait [#allocation6], 272  }
   0xe   :  { %390 = vsyncadd [#allocation6], 4294967024  ;;  %vm73_vm0 = vcmask 261120   ;;  %v69_v0 = vld [vmem:[#allocation2 + $0x10] sm:$0xff]  ;;  %v67_v1 = vld [vmem:[#allocation2] sm:$0xff]  ;;  %v400_v8 = vmov 32.0  }
   0xf   :  { %v80_v2 = vsel %vm73_vm0, %v69_v0, 0.0  ;;  %v74_v3 = vsel %vm73_vm0, %v67_v1, 0.0  ;;  %v70_v4 = vld [vmem:[#allocation2 + $0x18] sm:$0xff]  ;;  %v68_v5 = vld [vmem:[#allocation2 + $0x8] sm:$0xff]  ;;  %281 = vrcp.f32 %v400_v8  ;;  %vm230_vm14 = vcmask 785408   ;;  %s241_s16 = sshll.u32 %s495_s5, 4  ;;  %s242_s16 = int_to_ptr.hbm [resolvable:$true] %s241_s16 }
  0x10   :  { %81 = vadd.xlane.f32.xlu1 %v80_v2  ;;  %75 = vadd.xlane.f32.xlu0 %v74_v3  ;;  %v83_v6 = vsel %vm73_vm0, %v70_v4, 0.0  ;;  %v77_v7 = vsel %vm73_vm0, %v68_v5, 0.0  ;;  %v266_v35 = vld [vmem:[#allocation7 + $0x8] sm:$0xff]  ;;  %v265_v40 = vld [vmem:[#allocation7] sm:$0xff] }
  0x11   :  { %217 = vmatpush.bf16.msra.mxu0 %v266_v35  ;;  %267 = vmatpush.bf16.msra.mxu1 %v266_v35 }
  0x15   :  { %v282_v9 = vpop.eup %281  ;;  %218 = vmatpush.bf16.msra.mxu0 %v265_v40  ;;  %268 = vmatpush.bf16.msra.mxu1 %v265_v40 }
  0x16   :  { %v87_v10 = vmul.f32 32.0, %v282_v9  ;;  %vm91_vm1 = vweird.f32 %v282_v9 }
  0x18   :  { %84 = vadd.xlane.f32.xlu1 %v83_v6  ;;  %78 = vadd.xlane.f32.xlu0 %v77_v7  ;;  %v88_v11 = vsub.f32 1.0, %v87_v10  ;;  %v278_v10 = vld [vmem:[#allocation5] ss:$0 sm:$0xff] }
  0x1a   :  { %v89_v12 = vmul.f32 %v282_v9, %v88_v11 }
  0x1c   :  { %v90_v13 = vadd.f32 %v282_v9, %v89_v12 }
  0x1e   :  { %v92_v14 = vsel %vm91_vm1, %v282_v9, %v90_v13 }
  0x83   :  { %v82_v15 = vpop.xlane.xlu1 %81  ;;  %v76_v16 = vpop.xlane.xlu0 %75 }
  0x84   :  { %v95_v17 = vmul.f32 %v92_v14, %v82_v15  ;;  %v93_v18 = vmul.f32 %v92_v14, %v76_v16 }
  0x86   :  { %v448_v19 = vsub.f32 %v69_v0, %v95_v17  ;;  %v450_v20 = vsub.f32 %v67_v1, %v93_v18  ;;  %v279_v17 = vld [vmem:[%s492_s2] ss:$0 sm:$0xff]  ;;  %s401_s2 = smov [#allocation8]  }
  0x87   :  { %s239_s13 = sshll.u32 %s401_s2, 4  ;;  %s240_s13 = int_to_ptr.vmem [resolvable:$true] %s239_s13 }
  0x88   :  { %v103_v21 = vmul.f32 %v448_v19, %v448_v19  ;;  %v101_v22 = vmul.f32 %v450_v20, %v450_v20 }
  0x8a   :  { %v111_v23 = vsel %vm73_vm0, %v103_v21, 0.0  ;;  %v105_v24 = vsel %vm73_vm0, %v101_v22, 0.0 }
  0x8b   :  { %v85_v25 = vpop.xlane.xlu1 %84  ;;  %112 = vadd.xlane.f32.xlu0 %v111_v23  ;;  %106 = vadd.xlane.f32.xlu2 %v105_v24  ;;  %v79_v26 = vpop.xlane.xlu0 %78 }
  0x8c   :  { %v96_v27 = vmul.f32 %v92_v14, %v85_v25  ;;  %v94_v28 = vmul.f32 %v92_v14, %v79_v26 }
  0x8e   :  { %v458_v29 = vsub.f32 %v70_v4, %v96_v27  ;;  %v460_v30 = vsub.f32 %v68_v5, %v94_v28 }
  0x90   :  { %v104_v31 = vmul.f32 %v458_v29, %v458_v29  ;;  %v102_v32 = vmul.f32 %v460_v30, %v460_v30 }
  0x92   :  { %v114_v33 = vsel %vm73_vm0, %v104_v31, 0.0  ;;  %v108_v34 = vsel %vm73_vm0, %v102_v32, 0.0 }
  0x93   :  { %115 = vadd.xlane.f32.xlu1 %v114_v33  ;;  %109 = vadd.xlane.f32.xlu2 %v108_v34 }
  0xfe   :  { %v107_v36 = vpop.xlane.xlu2 %106  ;;  %v113_v37 = vpop.xlane.xlu0 %112 }
  0xff   :  { %v117_v38 = vmul.f32 %v107_v36, %v92_v14  ;;  %v119_v39 = vmul.f32 %v113_v37, %v92_v14 }
 0x101   :  { %v121_v41 = vadd.f32 1e-05, %v117_v38  ;;  %v123_v42 = vadd.f32 1e-05, %v119_v39 }
 0x103   :  { %283 = vrsqrt.f32 %v121_v41  ;;  %vm151_vm4 = vweird.f32 %v123_v42  ;;  %vm131_vm5 = vweird.f32 %v121_v41 }
 0x104   :  { %285 = vrsqrt.f32 %v123_v42 }
 0x106   :  { %v116_v43 = vpop.xlane.xlu1 %115  ;;  %v110_v44 = vpop.xlane.xlu2 %109 }
 0x107   :  { %v120_v45 = vmul.f32 %v116_v43, %v92_v14  ;;  %v118_v46 = vmul.f32 %v110_v44, %v92_v14 }
 0x109   :  { %v284_v47 = vpop.eup %283  ;;  %v124_v48 = vadd.f32 1e-05, %v120_v45  ;;  %v122_v49 = vadd.f32 1e-05, %v118_v46 }
 0x10a   :  { %v286_v50 = vpop.eup %285  ;;  %v126_v51 = vmul.f32 %v284_v47, %v121_v41  ;;  %vm132_vm3 = vweird.f32 %v284_v47 }
 0x10b   :  { %v146_v52 = vmul.f32 %v286_v50, %v123_v42  ;;  %287 = vrsqrt.f32 %v124_v48  ;;  %vm152_vm2 = vweird.f32 %v286_v50  ;;  %vm133_vm7 = vmor %vm131_vm5, %vm132_vm3  ;;  %vm161_vm10 = vweird.f32 %v124_v48 }
 0x10c   :  { %v127_v53 = vmul.f32 %v284_v47, %v126_v51  ;;  %289 = vrsqrt.f32 %v122_v49  ;;  %vm153_vm6 = vmor %vm151_vm4, %vm152_vm2  ;;  %vm141_vm12 = vweird.f32 %v122_v49 }
 0x10d   :  { %v147_v54 = vmul.f32 %v286_v50, %v146_v52 }
 0x10e   :  { %v128_v55 = vmul.f32 0.5, %v127_v53 }
 0x10f   :  { %v148_v56 = vmul.f32 0.5, %v147_v54 }
 0x110   :  { %v129_v57 = vsub.f32 1.5, %v128_v55 }
 0x111   :  { %v288_v58 = vpop.eup %287  ;;  %v149_v59 = vsub.f32 1.5, %v148_v56 }
 0x112   :  { %v290_v60 = vpop.eup %289  ;;  %v156_v61 = vmul.f32 %v288_v58, %v124_v48  ;;  %v130_v62 = vmul.f32 %v284_v47, %v129_v57  ;;  %vm162_vm8 = vweird.f32 %v288_v58 }
 0x113   :  { %v150_v63 = vmul.f32 %v286_v50, %v149_v59  ;;  %v136_v0 = vmul.f32 %v290_v60, %v122_v49  ;;  %vm142_vm9 = vweird.f32 %v290_v60  ;;  %vm163_vm11 = vmor %vm161_vm10, %vm162_vm8 }
 0x114   :  { %v157_v1 = vmul.f32 %v288_v58, %v156_v61  ;;  %v134_v5 = vsel %vm133_vm7, %v284_v47, %v130_v62  ;;  %vm143_vm13 = vmor %vm141_vm12, %vm142_vm9 }
 0x115   :  { %v137_v2 = vmul.f32 %v290_v60, %v136_v0  ;;  %v154_v3 = vsel %vm153_vm6, %v286_v50, %v150_v63  ;;  %v165_v11 = vmul.f32 %v134_v5, %v450_v20 }
 0x116   :  { %v158_v4 = vmul.f32 0.5, %v157_v1  ;;  %v167_v8 = vmul.f32 %v154_v3, %v448_v19 }
 0x117   :  { %v138_v6 = vmul.f32 0.5, %v137_v2  ;;  %v172_v21 = vmul.f32 %v278_v10, %v165_v11 }
 0x118   :  { %v159_v7 = vsub.f32 1.5, %v158_v4  ;;  %v174_v18 = vmul.f32 %v278_v10, %v167_v8 }
 0x119   :  { %v139_v9 = vsub.f32 1.5, %v138_v6  ;;  %v179_v25 = vadd.f32 %v279_v17, %v172_v21 }
 0x11a   :  { %v160_v12 = vmul.f32 %v288_v58, %v159_v7  ;;  %v181_v23 = vadd.f32 %v279_v17, %v174_v18 }
 0x11b   :  { %v140_v13 = vmul.f32 %v290_v60, %v139_v9 }
 0x11c   :  { %v164_v14 = vsel %vm163_vm11, %v288_v58, %v160_v12 }
 0x11d   :  { %v168_v15 = vmul.f32 %v164_v14, %v458_v29  ;;  %v144_v16 = vsel %vm143_vm13, %v290_v60, %v140_v13  ;;  %v280_v29 = vld [vmem:[%s494_s4] ss:$0 sm:$0xff] }
 0x11e   :  { %v166_v19 = vmul.f32 %v144_v16, %v460_v30 }
 0x11f   :  { %v175_v22 = vmul.f32 %v278_v10, %v168_v15 }
 0x120   :  { %v173_v20 = vmul.f32 %v278_v10, %v166_v19 }
 0x121   :  { %v182_v24 = vadd.f32 %v279_v17, %v175_v22 }
 0x122   :  { %v180_v26 = vadd.f32 %v279_v17, %v173_v20 }
 0x123   :  { %v184_v27 = vpack.c.bf16 %v182_v24, %v181_v23 }
 0x124   :  { %v183_v28 = vpack.c.bf16 %v180_v26, %v179_v25 }
 0x125   :  { %264 = vmatmul.msk.bf16.vlgmr.msra.gmra.mxu1 %vm73_vm0, %v184_v27 }
 0x126   :  { %263 = vmatmul.msk.bf16.vlgmr.msra.gmra.mxu0 %vm73_vm0, %v183_v28 }
 0x1a2   :  { %v225_v31 = vpop.f32.mrf.mxu1 }
 0x1a3   :  { %v220_v30 = vpop.f32.mrf.mxu0  ;;  %v226_v32 = vadd.f32 %v280_v29, %v225_v31 }
 0x1a4   :  { %v221_v33 = vadd.f32 %v280_v29, %v220_v30 }
 0x1a5   :  { %233 = vst.msk [vmem:[#allocation8 + $0x10] sm:$0xff] %vm230_vm14, %v226_v32 }
 0x1a6   :  { %231 = vst.msk [vmem:[#allocation8] sm:$0xff] %vm230_vm14, %v221_v33 }
 0x1aa   :  { %v227_v34 = vpop.f32.mrf.mxu1 }
 0x1ab   :  { %v222_v35 = vpop.f32.mrf.mxu0  ;;  %v228_v36 = vadd.f32 %v280_v29, %v227_v34 }
 0x1ac   :  { %v223_v37 = vadd.f32 %v280_v29, %v222_v35 }
 0x1ad   :  { %234 = vst.msk [vmem:[#allocation8 + $0x18] sm:$0xff] %vm230_vm14, %v228_v36 }
 0x1ae   :  { %232 = vst.msk [vmem:[#allocation8 + $0x8] sm:$0xff] %vm230_vm14, %v223_v37 }
 0x1af   :  { %247 = dma.vmem_to_hbm [thread:$0]  %s240_s13, 512, %s242_s16, [#allocation4], %s395_s28, %s395_s28, %s396_s29  }
 0x1b0   :  { %391 = dma.done.wait [#allocation4], 512  }
 0x1b1   :  { %392 = vsyncadd [#allocation4], 4294966784 }
 0x1b2   :  { %252 = vsyncpa [#allocation3], 1 }
 0x1b3   :  { %253 = vsyncpa [#allocation6], 1 }
 0x1b4   :  { %254 = vsyncpa [#allocation4], 1 }

</bundles_post_ra>
